<compile_context>
chip_gen: v7x
topology: tpu7x:2x2x1
jax: 0.10.0
libtpu: 0.0.40
codegen_flags: <defaults>
</compile_context>

<pallas_src>
import jax
import jax.numpy as jnp
from jax.experimental import pallas as pl
from jax.experimental.pallas import tpu as pltpu

# ---------------- model hyper-parameters -----------------------------------
B = 8                      # batch
C, H, W = 1, 16, 16        # image: (B, 1, 16, 16) -> flattened 256
D_IN = C * H * W           # 256   (etype "mlp-256-64")
D_HID = 64                 # encoder hidden / decoder hidden
LATENT = 16                # latent size
D_OUT = 256                # decoder output size (dtype "mlp-64-256")
HEAD_PAD = 128             # lane-dense padded width of fused means|log_var head

# row offsets (8-aligned) inside the packed bias tile (shape (32, 256))
_ROW_EB1, _ROW_EBMV, _ROW_DB1, _ROW_DB2 = 0, 8, 16, 24


def vae_kernel(x_ref, eps_ref, ew1_ref, wsmall_ref, dw2_ref, bias_ref,
               recon_ref, mv_ref):
    x = x_ref[...]                                            # (B, D_IN)

    # ---- unpack packed params (static, 8/128-friendly slices) ---------
    eb1 = bias_ref[_ROW_EB1:_ROW_EB1 + 1, 0:D_HID]            # (1, 64)
    ebmv = bias_ref[_ROW_EBMV:_ROW_EBMV + 1, 0:HEAD_PAD]      # (1, 128)
    db1 = bias_ref[_ROW_DB1:_ROW_DB1 + 1, 0:D_HID]            # (1, 64)
    db2 = bias_ref[_ROW_DB2:_ROW_DB2 + 1, 0:D_OUT]            # (1, 256)

    ewmv = wsmall_ref[0:D_HID, :]                             # (64, 128)
    dw1 = wsmall_ref[D_HID:D_HID + LATENT, 0:D_HID]           # (16, 64)

    # ---- Encoder: Linear(256,64) + ReLU -------------------------------
    h = jnp.dot(x, ew1_ref[...], preferred_element_type=jnp.float32) + eb1
    h = jnp.maximum(h, 0.0)

    # ---- fused linear_means | linear_log_var (single MXU pass) --------
    # columns 0:16 = means, 16:32 = log_var, 32:128 = zero padding
    mv = jnp.dot(h, ewmv, preferred_element_type=jnp.float32) + ebmv  # (B, 128)
    means = mv[:, 0:LATENT]
    log_var = mv[:, LATENT:2 * LATENT]

    # ---- reparameterization: z = eps * exp(0.5*log_var) + means -------
    std = jnp.exp(0.5 * log_var)
    z = eps_ref[...] * std + means                            # (B, LATENT)

    # ---- Decoder: Linear(16,64)+ReLU, Linear(64,256)+Sigmoid ----------
    d = jnp.dot(z, dw1, preferred_element_type=jnp.float32) + db1
    d = jnp.maximum(d, 0.0)
    logits = jnp.dot(d, dw2_ref[...], preferred_element_type=jnp.float32) + db2
    # Decoder.forward applies F.sigmoid ON TOP of the in-Sequential Sigmoid.
    recon = jax.nn.sigmoid(jax.nn.sigmoid(logits))

    recon_ref[...] = recon                                    # (B, 256) lane-dense
    mv_ref[...] = mv                                          # (B, 128) lane-dense


def _vae_pallas(x_flat, eps, ew1, wsmall, dw2, bias):
    flops = 2 * B * (D_IN * D_HID + D_HID * HEAD_PAD + LATENT * D_HID
                     + D_HID * D_OUT)
    transcendentals = B * (LATENT + 2 * D_OUT)                # exp + 2x sigmoid
    bytes_accessed = 4 * (x_flat.size + eps.size + ew1.size + wsmall.size
                          + dw2.size + bias.size + B * D_OUT + B * HEAD_PAD)

    vmem = pl.BlockSpec(memory_space=pltpu.MemorySpace.VMEM)
    # TODO(synk): if batch grows beyond a few thousand rows, add a batch grid
    # (block ~512 rows) with dimension_semantics=("parallel",) and keep the
    # weight index_maps batch-invariant so weights stay resident.
    return pl.pallas_call(
        vae_kernel,
        out_shape=(
            jax.ShapeDtypeStruct((B, D_OUT), jnp.float32),    # recon
            jax.ShapeDtypeStruct((B, HEAD_PAD), jnp.float32), # means|log_var|pad
        ),
        in_specs=[vmem] * 6,
        out_specs=(vmem, vmem),
        cost_estimate=pl.CostEstimate(flops=flops,
                                      transcendentals=transcendentals,
                                      bytes_accessed=bytes_accessed),
    )(x_flat, eps, ew1, wsmall, dw2, bias)


@jax.jit
def vae_forward(x_nchw, eps, packed):
    """x_nchw: (B, C, H, W) f32; eps: (B, LATENT) f32; packed: packed params."""
    x_flat = x_nchw.reshape(x_nchw.shape[0], -1)              # Flatten()
    recon, mv = _vae_pallas(x_flat, eps, packed["ew1"], packed["wsmall"],
                            packed["dw2"], packed["bias"])
    means = mv[:, 0:LATENT]
    log_var = mv[:, LATENT:2 * LATENT]
    return recon, means, log_var, {}


# ---------------- parameter handling ---------------------------------------
def init_params(key):
    ks = jax.random.split(key, 6)
    scale = 0.05
    return {
        # encoder main: Linear(D_IN, D_HID)     (stored as (in, out))
        "ew1": scale * jax.random.normal(ks[0], (D_IN, D_HID), jnp.float32),
        "eb1": jnp.zeros((1, D_HID), jnp.float32),
        # linear_means / linear_log_var: Linear(D_HID, LATENT)
        "ewm": scale * jax.random.normal(ks[1], (D_HID, LATENT), jnp.float32),
        "ebm": jnp.zeros((1, LATENT), jnp.float32),
        "ewv": scale * jax.random.normal(ks[2], (D_HID, LATENT), jnp.float32),
        "ebv": jnp.zeros((1, LATENT), jnp.float32),
        # decoder: Linear(LATENT, D_HID), Linear(D_HID, D_OUT)
        "dw1": scale * jax.random.normal(ks[3], (LATENT, D_HID), jnp.float32),
        "db1": jnp.zeros((1, D_HID), jnp.float32),
        "dw2": scale * jax.random.normal(ks[4], (D_HID, D_OUT), jnp.float32),
        "db2": jnp.zeros((1, D_OUT), jnp.float32),
    }


def pack_params(p):
    """Pack the 10 parameter tensors into 4 DMA-friendly buffers."""
    # fused, lane-padded means|log_var head weight: (D_HID, 128)
    wsmall = jnp.zeros((D_HID + LATENT, HEAD_PAD), jnp.float32)
    wsmall = wsmall.at[0:D_HID, 0:LATENT].set(p["ewm"])
    wsmall = wsmall.at[0:D_HID, LATENT:2 * LATENT].set(p["ewv"])
    # decoder L0 weight (16, 64), lane-padded to 128
    wsmall = wsmall.at[D_HID:D_HID + LATENT, 0:D_HID].set(p["dw1"])

    # all biases in a single (32, 256) tile, each on an 8-aligned row
    bias = jnp.zeros((32, D_OUT), jnp.float32)
    bias = bias.at[_ROW_EB1, 0:D_HID].set(p["eb1"][0])
    bias = bias.at[_ROW_EBMV, 0:LATENT].set(p["ebm"][0])
    bias = bias.at[_ROW_EBMV, LATENT:2 * LATENT].set(p["ebv"][0])
    bias = bias.at[_ROW_DB1, 0:D_HID].set(p["db1"][0])
    bias = bias.at[_ROW_DB2, 0:D_OUT].set(p["db2"][0])

    return {"ew1": p["ew1"], "wsmall": wsmall, "dw2": p["dw2"], "bias": bias}


def vae_forward_ref(x_nchw, eps, p):
    """Pure-JAX reference (un-packed params) for correctness check."""
    x = x_nchw.reshape(x_nchw.shape[0], -1)
    h = jnp.maximum(x @ p["ew1"] + p["eb1"], 0.0)
    means = h @ p["ewm"] + p["ebm"]
    log_var = h @ p["ewv"] + p["ebv"]
    z = eps * jnp.exp(0.5 * log_var) + means
    d = jnp.maximum(z @ p["dw1"] + p["db1"], 0.0)
    recon = jax.nn.sigmoid(jax.nn.sigmoid(d @ p["dw2"] + p["db2"]))
    return recon, means, log_var


if __name__ == "__main__":
    key = jax.random.PRNGKey(0)
    k_x, k_eps, k_p = jax.random.split(key, 3)

    x = jax.random.uniform(k_x, (B, C, H, W), jnp.float32)      # NCHW input
    eps = jax.random.normal(k_eps, (B, LATENT), jnp.float32)    # reparam noise
    params = init_params(k_p)
    packed = pack_params(params)

    recon, means, log_var, kwargs = vae_forward(x, eps, packed)
    jax.block_until_ready((recon, means, log_var))

    # sanity-check against pure-JAX reference
    r_ref, m_ref, lv_ref = vae_forward_ref(x, eps, params)
    assert recon.shape == (B, D_OUT) and means.shape == (B, LATENT)
    assert log_var.shape == (B, LATENT)
    assert jnp.allclose(recon, r_ref, atol=1e-5)
    assert jnp.allclose(means, m_ref, atol=1e-5)
    assert jnp.allclose(log_var, lv_ref, atol=1e-5)

    print("KERNEL_OK")
</pallas_src>

<mosaic_0001>
module attributes {stable_mosaic.version = 11 : i64} {
  func.func @vae_kernel(%arg0: memref<8x256xf32, #tpu.memory_space<vmem>>, %arg1: memref<8x16xf32, #tpu.memory_space<vmem>>, %arg2: memref<256x64xf32, #tpu.memory_space<vmem>>, %arg3: memref<80x128xf32, #tpu.memory_space<vmem>>, %arg4: memref<64x256xf32, #tpu.memory_space<vmem>>, %arg5: memref<32x256xf32, #tpu.memory_space<vmem>>, %arg6: memref<8x256xf32, #tpu.memory_space<vmem>>, %arg7: memref<8x128xf32, #tpu.memory_space<vmem>>) attributes {dimension_semantics = [], scalar_prefetch = 0 : i64, scratch_operands = 0 : i64, tpu.core_type = #tpu.core_type<tc>} {
    %c0 = arith.constant 0 : index
    %c0_0 = arith.constant 0 : index
    %0 = vector.load %arg0[%c0, %c0_0] : memref<8x256xf32, #tpu.memory_space<vmem>>, vector<8x256xf32>
    %c0_1 = arith.constant 0 : index
    %c0_2 = arith.constant 0 : index
    %1 = vector.load %arg5[%c0_1, %c0_2] : memref<32x256xf32, #tpu.memory_space<vmem>>, vector<1x64xf32>
    %c8 = arith.constant 8 : index
    %c0_3 = arith.constant 0 : index
    %2 = vector.load %arg5[%c8, %c0_3] : memref<32x256xf32, #tpu.memory_space<vmem>>, vector<1x128xf32>
    %c16 = arith.constant 16 : index
    %c0_4 = arith.constant 0 : index
    %3 = vector.load %arg5[%c16, %c0_4] : memref<32x256xf32, #tpu.memory_space<vmem>>, vector<1x64xf32>
    %c24 = arith.constant 24 : index
    %c0_5 = arith.constant 0 : index
    %4 = vector.load %arg5[%c24, %c0_5] : memref<32x256xf32, #tpu.memory_space<vmem>>, vector<1x256xf32>
    %c0_6 = arith.constant 0 : index
    %c0_7 = arith.constant 0 : index
    %5 = vector.load %arg3[%c0_6, %c0_7] : memref<80x128xf32, #tpu.memory_space<vmem>>, vector<64x128xf32>
    %c64 = arith.constant 64 : index
    %c0_8 = arith.constant 0 : index
    %6 = vector.load %arg3[%c64, %c0_8] : memref<80x128xf32, #tpu.memory_space<vmem>>, vector<16x64xf32>
    %c0_9 = arith.constant 0 : index
    %c0_10 = arith.constant 0 : index
    %7 = vector.load %arg2[%c0_9, %c0_10] : memref<256x64xf32, #tpu.memory_space<vmem>>, vector<256x64xf32>
    %cst = arith.constant dense<0.000000e+00> : vector<8x64xf32>
    %8 = tpu.matmul %0, %7, %cst {dimension_numbers = #tpu.dot_dimension_numbers<[1], [0], [0], [1], [0, 0, 1, 1], [], []>} : vector<8x256xf32>, vector<256x64xf32>, vector<8x64xf32> -> vector<8x64xf32>
    %9 = vector.broadcast %1 : vector<1x64xf32> to vector<8x64xf32>
    %10 = arith.addf %8, %9 : vector<8x64xf32>
    %cst_11 = arith.constant 0.000000e+00 : f32
    %11 = vector.broadcast %cst_11 : f32 to vector<8x64xf32>
    %12 = arith.maximumf %10, %11 : vector<8x64xf32>
    %cst_12 = arith.constant dense<0.000000e+00> : vector<8x128xf32>
    %13 = tpu.matmul %12, %5, %cst_12 {dimension_numbers = #tpu.dot_dimension_numbers<[1], [0], [0], [1], [0, 0, 1, 1], [], []>} : vector<8x64xf32>, vector<64x128xf32>, vector<8x128xf32> -> vector<8x128xf32>
    %14 = vector.broadcast %2 : vector<1x128xf32> to vector<8x128xf32>
    %15 = arith.addf %13, %14 : vector<8x128xf32>
    %16 = vector.extract_strided_slice %15 {offsets = [0, 0], sizes = [8, 16], strides = [1, 1]} : vector<8x128xf32> to vector<8x16xf32>
    %17 = vector.extract_strided_slice %15 {offsets = [0, 16], sizes = [8, 16], strides = [1, 1]} : vector<8x128xf32> to vector<8x16xf32>
    %cst_13 = arith.constant 5.000000e-01 : f32
    %18 = vector.broadcast %cst_13 : f32 to vector<8x16xf32>
    %19 = arith.mulf %18, %17 : vector<8x16xf32>
    %20 = math.exp %19 : vector<8x16xf32>
    %c0_14 = arith.constant 0 : index
    %c0_15 = arith.constant 0 : index
    %21 = vector.load %arg1[%c0_14, %c0_15] : memref<8x16xf32, #tpu.memory_space<vmem>>, vector<8x16xf32>
    %22 = arith.mulf %21, %20 : vector<8x16xf32>
    %23 = arith.addf %22, %16 : vector<8x16xf32>
    %cst_16 = arith.constant dense<0.000000e+00> : vector<8x64xf32>
    %24 = tpu.matmul %23, %6, %cst_16 {dimension_numbers = #tpu.dot_dimension_numbers<[1], [0], [0], [1], [0, 0, 1, 1], [], []>} : vector<8x16xf32>, vector<16x64xf32>, vector<8x64xf32> -> vector<8x64xf32>
    %25 = vector.broadcast %3 : vector<1x64xf32> to vector<8x64xf32>
    %26 = arith.addf %24, %25 : vector<8x64xf32>
    %cst_17 = arith.constant 0.000000e+00 : f32
    %27 = vector.broadcast %cst_17 : f32 to vector<8x64xf32>
    %28 = arith.maximumf %26, %27 : vector<8x64xf32>
    %c0_18 = arith.constant 0 : index
    %c0_19 = arith.constant 0 : index
    %29 = vector.load %arg4[%c0_18, %c0_19] : memref<64x256xf32, #tpu.memory_space<vmem>>, vector<64x256xf32>
    %cst_20 = arith.constant dense<0.000000e+00> : vector<8x256xf32>
    %30 = tpu.matmul %28, %29, %cst_20 {dimension_numbers = #tpu.dot_dimension_numbers<[1], [0], [0], [1], [0, 0, 1, 1], [], []>} : vector<8x64xf32>, vector<64x256xf32>, vector<8x256xf32> -> vector<8x256xf32>
    %31 = vector.broadcast %4 : vector<1x256xf32> to vector<8x256xf32>
    %32 = arith.addf %30, %31 : vector<8x256xf32>
    %33 = arith.negf %32 : vector<8x256xf32>
    %34 = math.exp %33 : vector<8x256xf32>
    %cst_21 = arith.constant 1.000000e+00 : f32
    %35 = vector.broadcast %cst_21 : f32 to vector<8x256xf32>
    %36 = arith.addf %35, %34 : vector<8x256xf32>
    %37 = arith.divf %35, %36 : vector<8x256xf32>
    %38 = arith.negf %37 : vector<8x256xf32>
    %39 = math.exp %38 : vector<8x256xf32>
    %cst_22 = arith.constant 1.000000e+00 : f32
    %40 = vector.broadcast %cst_22 : f32 to vector<8x256xf32>
    %41 = arith.addf %40, %39 : vector<8x256xf32>
    %42 = arith.divf %40, %41 : vector<8x256xf32>
    %c0_23 = arith.constant 0 : index
    %c0_24 = arith.constant 0 : index
    %43 = vector.load %arg6[%c0_23, %c0_24] : memref<8x256xf32, #tpu.memory_space<vmem>>, vector<8x256xf32>
    tpu.vector_store %arg6[%c0_23, %c0_24], %42 {strides = array<i32>} : memref<8x256xf32, #tpu.memory_space<vmem>>, vector<8x256xf32>,
    %c0_25 = arith.constant 0 : index
    %c0_26 = arith.constant 0 : index
    %44 = vector.load %arg7[%c0_25, %c0_26] : memref<8x128xf32, #tpu.memory_space<vmem>>, vector<8x128xf32>
    tpu.vector_store %arg7[%c0_25, %c0_26], %15 {strides = array<i32>} : memref<8x128xf32, #tpu.memory_space<vmem>>, vector<8x128xf32>,
    return
  }
}

</mosaic_0001>

<bundles_post_ra>
// kernel: vae_forward.1
= control target key start
LH: loop header
LB: loop body
LE: loop exit
PB: predicated region body
PF: predicated region fallthrough
CT: control target
= control target key end

     0   :  { %v642_v7 = vmov 0.0|0.0   ;;  %s904_s0 = inlined_call_operand.vmem [shape: f32[8,256], index: 0, kind: input, shape index: {}]   ;;  %s905_s1 = inlined_call_operand.vmem [shape: f32[8,16], index: 1, kind: input, shape index: {}]   ;;  %s906_s2 = inlined_call_operand.vmem [shape: f32[256,64], index: 2, kind: input, shape index: {}]   ;;  %s907_s3 = inlined_call_operand.vmem [shape: f32[80,128], index: 3, kind: input, shape index: {}]   ;;  %s908_s4 = inlined_call_operand.vmem [shape: f32[64,256], index: 4, kind: input, shape index: {}]   ;;  %s909_s5 = inlined_call_operand.vmem [shape: f32[32,256], index: 5, kind: input, shape index: {}]   ;;  %s910_s6 = inlined_call_operand.hbm [shape: f32[8,256], index: 6, kind: output, shape index: {0}]   ;;  %s911_s7 = inlined_call_operand.vmem [shape: f32[8,128], index: 7, kind: output, shape index: {1}]  }
   0x1   :  { %v59_v0 = vld [vmem:[%s906_s2 + $0x80] sm:$0xff]  ;;  %v60_v1 = vld [vmem:[%s906_s2 + $0x88] sm:$0xff]  ;;  %v61_v5 = vld [vmem:[%s906_s2 + $0x90] sm:$0xff]  ;;  %564 = vmatprep.subr.bf16.mxu1 %v642_v7 }
   0x2   :  { %v43_v2 = vld [vmem:[%s906_s2] sm:$0xff]  ;;  %v532_v3 = vpack.c.bf16 %v60_v1, %v59_v0  ;;  %v44_v4 = vld [vmem:[%s906_s2 + $0x8] sm:$0xff]  ;;  %v62_v6 = vld [vmem:[%s906_s2 + $0x98] sm:$0xff] }
   0x3   :  { %v534_v8 = vpack.c.bf16 %v44_v4, %v43_v2  ;;  %v536_v9 = vpack.c.bf16 %v62_v6, %v61_v5  ;;  %v45_v10 = vld [vmem:[%s906_s2 + $0x10] sm:$0xff]  ;;  %v46_v11 = vld [vmem:[%s906_s2 + $0x18] sm:$0xff]  ;;  %v63_v12 = vld [vmem:[%s906_s2 + $0xa0] sm:$0xff] }
   0x4   :  { %533 = vmatprep.subr.bf16.mxu0 %v532_v3  ;;  %v64_v13 = vld [vmem:[%s906_s2 + $0xa8] sm:$0xff]  ;;  %v538_v14 = vpack.c.bf16 %v46_v11, %v45_v10  ;;  %v47_v16 = vld [vmem:[%s906_s2 + $0x20] sm:$0xff]  ;;  %v65_v18 = vld [vmem:[%s906_s2 + $0xb0] sm:$0xff] }
   0x5   :  { %535 = vmatpush3.bf16.msra.mxu0 %v534_v8  ;;  %v540_v15 = vpack.c.bf16 %v64_v13, %v63_v12  ;;  %v48_v17 = vld [vmem:[%s906_s2 + $0x28] sm:$0xff]  ;;  %v66_v19 = vld [vmem:[%s906_s2 + $0xb8] sm:$0xff]  ;;  %v49_v22 = vld [vmem:[%s906_s2 + $0x30] sm:$0xff] }
   0x6   :  { %537 = vmatprep.subr.bf16.mxu0 %v536_v9  ;;  %v542_v20 = vpack.c.bf16 %v48_v17, %v47_v16  ;;  %v544_v21 = vpack.c.bf16 %v66_v19, %v65_v18  ;;  %v50_v23 = vld [vmem:[%s906_s2 + $0x38] sm:$0xff]  ;;  %v67_v24 = vld [vmem:[%s906_s2 + $0xc0] sm:$0xff]  ;;  %v68_v25 = vld [vmem:[%s906_s2 + $0xc8] sm:$0xff] }
   0x7   :  { %v27_v26 = vld [vmem:[%s904_s0 + $0x8] sm:$0xff]  ;;  %v33_v27 = vld [vmem:[%s907_s3] sm:$0xff]  ;;  %v546_v29 = vpack.c.bf16 %v50_v23, %v49_v22  ;;  %v35_v31 = vld [vmem:[%s907_s3 + $0x10] sm:$0xff] }
   0x8   :  { %139 = vmatprep.mubr.f32.mxu0 %v27_v26  ;;  %v34_v28 = vld [vmem:[%s907_s3 + $0x8] sm:$0xff]  ;;  %v36_v32 = vld [vmem:[%s907_s3 + $0x18] sm:$0xff] }
   0x9   :  { %539 = vmatpush3.bf16.msra.mxu0 %v538_v14  ;;  %v565_v30 = vpack.c.bf16 %v34_v28, %v33_v27 }
   0xa   :  { %541 = vmatprep.subr.bf16.mxu0 %v540_v15 }
   0xd   :  { %543 = vmatpush3.bf16.msra.mxu0 %v542_v20 }
   0xe   :  { %13 = vsyncpa [#allocation3], 0  ;;  %545 = vmatprep.subr.bf16.mxu0 %v544_v21  ;;  %v548_v33 = vpack.c.bf16 %v68_v25, %v67_v24  ;;  %v51_v34 = vld [vmem:[%s906_s2 + $0x40] sm:$0xff]  ;;  %v52_v35 = vld [vmem:[%s906_s2 + $0x48] sm:$0xff]  ;;  %566 = vmatpush3.bf16.msra.mxu1 %v565_v30  ;;  %v568_v38 = vpack.c.bf16 %v36_v32, %v35_v31  ;;  %vm643_vm0 = vmmov 0   ;;  %v644_v63 = vmov 0.0  }
   0xf   :  { %v69_v36 = vld [vmem:[%s906_s2 + $0xd0] sm:$0xff]  ;;  %v70_v37 = vld [vmem:[%s906_s2 + $0xd8] sm:$0xff]  ;;  %567 = vmatprep.subr.bf16.mxu1 %v642_v7  ;;  %v550_v39 = vpack.c.bf16 %v52_v35, %v51_v34  ;;  %v71_v43 = vld [vmem:[%s906_s2 + $0xe0] sm:$0xff]  ;;  %522 = vmatprep.mubr.msk.f32.mxu1 %vm643_vm0, %v644_v63  ;;  %vm146_vm1 = vcmask 523264   ;;  %vm230_vm2 = vcmask 130048  }
  0x10   :  { %v552_v40 = vpack.c.bf16 %v70_v37, %v69_v36  ;;  %v53_v41 = vld [vmem:[%s906_s2 + $0x50] sm:$0xff]  ;;  %v54_v42 = vld [vmem:[%s906_s2 + $0x58] sm:$0xff]  ;;  %v72_v44 = vld [vmem:[%s906_s2 + $0xe8] sm:$0xff] }
  0x11   :  { %547 = vmatpush3.bf16.msra.mxu0 %v546_v29  ;;  %v554_v45 = vpack.c.bf16 %v54_v42, %v53_v41  ;;  %v556_v46 = vpack.c.bf16 %v72_v44, %v71_v43  ;;  %v55_v47 = vld [vmem:[%s906_s2 + $0x60] sm:$0xff]  ;;  %v56_v48 = vld [vmem:[%s906_s2 + $0x68] sm:$0xff]  ;;  %v73_v49 = vld [vmem:[%s906_s2 + $0xf0] sm:$0xff] }
  0x12   :  { %549 = vmatprep.subr.bf16.mxu0 %v548_v33  ;;  %569 = vmatpush3.bf16.msra.mxu1 %v568_v38  ;;  %v74_v50 = vld [vmem:[%s906_s2 + $0xf8] sm:$0xff]  ;;  %v558_v51 = vpack.c.bf16 %v56_v48, %v55_v47  ;;  %v57_v53 = vld [vmem:[%s906_s2 + $0x70] sm:$0xff]  ;;  %v26_v56 = vld [vmem:[%s904_s0] sm:$0xff] }
  0x13   :  { %570 = vmatprep.subr.bf16.mxu1 %v642_v7  ;;  %v560_v52 = vpack.c.bf16 %v74_v50, %v73_v49  ;;  %v58_v54 = vld [vmem:[%s906_s2 + $0x78] sm:$0xff]  ;;  %v37_v57 = vld [vmem:[%s907_s3 + $0x20] sm:$0xff]  ;;  %v38_v58 = vld [vmem:[%s907_s3 + $0x28] sm:$0xff]  ;;  %v322_v49 = vlaneseq }
  0x14   :  { %v562_v55 = vpack.c.bf16 %v58_v54, %v57_v53  ;;  %v571_v59 = vpack.c.bf16 %v38_v58, %v37_v57  ;;  %v39_v60 = vld [vmem:[%s907_s3 + $0x30] sm:$0xff]  ;;  %v40_v61 = vld [vmem:[%s907_s3 + $0x38] sm:$0xff]  ;;  %v28_v1 = vld [vmem:[%s909_s5] ss:$0 sm:$0xff] }
  0x15   :  { %551 = vmatpush3.bf16.msra.mxu0 %v550_v39  ;;  %v574_v62 = vpack.c.bf16 %v40_v61, %v39_v60  ;;  %v29_v6 = vld [vmem:[%s909_s5 + $0x10] ss:$0 sm:$0xff]  ;;  %v41_v11 = vld [vmem:[%s907_s3 + $0x40] sm:$0xff]  ;;  %v42_v12 = vld [vmem:[%s907_s3 + $0x48] sm:$0xff]  ;;  %v323_v50 = vshrl.u32 %v322_v49, 7 }
  0x16   :  { %553 = vmatprep.subr.bf16.mxu0 %v552_v40  ;;  %572 = vmatpush3.bf16.msra.mxu1 %v571_v59  ;;  %v577_v13 = vpack.c.bf16 %v42_v12, %v41_v11  ;;  %v306_v15 = vld [vmem:[%s908_s4 + $0x8] sm:$0xff]  ;;  %v308_v16 = vld [vmem:[%s908_s4 + $0x18] sm:$0xff]  ;;  %v223_v19 = vld [vmem:[%s905_s1] sm:$0xff] }
  0x17   :  { %573 = vmatprep.subr.bf16.mxu1 %v642_v7  ;;  %v579_v17 = vpack.c.bf16 %v308_v16, %v306_v15  ;;  %v305_v20 = vld [vmem:[%s908_s4] sm:$0xff]  ;;  %v307_v21 = vld [vmem:[%s908_s4 + $0x10] sm:$0xff]  ;;  %v310_v23 = vld [vmem:[%s908_s4 + $0x28] sm:$0xff]  ;;  %v328_v53 = vsub.s32 1, %v323_v50 }
  0x18   :  { %v312_v24 = vld [vmem:[%s908_s4 + $0x38] sm:$0xff]  ;;  %v581_v26 = vpack.c.bf16 %v307_v21, %v305_v20  ;;  %v309_v29 = vld [vmem:[%s908_s4 + $0x20] sm:$0xff]  ;;  %v311_v30 = vld [vmem:[%s908_s4 + $0x30] sm:$0xff] }
  0x19   :  { %555 = vmatpush3.bf16.msra.mxu0 %v554_v45  ;;  %v583_v28 = vpack.c.bf16 %v312_v24, %v310_v23  ;;  %v314_v31 = vld [vmem:[%s908_s4 + $0x48] sm:$0xff]  ;;  %v316_v32 = vld [vmem:[%s908_s4 + $0x58] sm:$0xff]  ;;  %v585_v33 = vpack.c.bf16 %v311_v30, %v309_v29  ;;  %v313_v35 = vld [vmem:[%s908_s4 + $0x40] sm:$0xff] }
  0x1a   :  { %557 = vmatprep.subr.bf16.mxu0 %v556_v46  ;;  %575 = vmatpush3.bf16.msra.mxu1 %v574_v62  ;;  %v587_v34 = vpack.c.bf16 %v316_v32, %v314_v31  ;;  %v315_v36 = vld [vmem:[%s908_s4 + $0x50] sm:$0xff]  ;;  %v318_v38 = vld [vmem:[%s908_s4 + $0x68] sm:$0xff]  ;;  %v320_v39 = vld [vmem:[%s908_s4 + $0x78] sm:$0xff] }
  0x1b   :  { %576 = vmatprep.subr.bf16.mxu1 %v642_v7  ;;  %v589_v37 = vpack.c.bf16 %v315_v36, %v313_v35  ;;  %v591_v40 = vpack.c.bf16 %v320_v39, %v318_v38  ;;  %v317_v41 = vld [vmem:[%s908_s4 + $0x60] sm:$0xff]  ;;  %v319_v42 = vld [vmem:[%s908_s4 + $0x70] sm:$0xff]  ;;  %s646_s4 = smov [#allocation2]  }
  0x1c   :  { %v593_v43 = vpack.c.bf16 %v319_v42, %v317_v41  ;;  %v30_v44 = vld [vmem:[%s909_s5 + $0x20] ss:$0 sm:$0xff] }
  0x1d   :  { %559 = vmatpush3.bf16.msra.mxu0 %v558_v51  ;;  %v324_v51 = vsub.s32 0, %v323_v50 }
  0x1e   :  { %561 = vmatprep.subr.bf16.mxu0 %v560_v52  ;;  %v451_v52 = vld [vmem:[%s909_s5 + $0x30] ss:$8 sm:$0x3]  ;;  %s439_s5 = sshll.u32 %s646_s4, 4  ;;  %s440_s5 = int_to_ptr.vmem [resolvable:$true] %s439_s5 }
  0x1f   :  { %v325_v54 = vrot.slane %v451_v52, %v324_v51  ;;  %s618_s10 = scalar_lea.vmem %s440_s5, 256  ;;  %p623_p1 = scmp.lt.s32.totalorder %s440_s5, %s440_s5 }
  0x20   :  { %p619_p0 = scmp.ne.s32.totalorder %s440_s5, %s618_s10  ;;  %p624_p2 = scmp.lt.s32.totalorder %s618_s10, %s618_s10 }
  0x21   :  { %563 = vmatpush3.bf16.msra.mxu0 %v562_v55  ;;  %v329_v55 = vrot.slane %v451_v52, %v328_v53 }
  0x22   :  { %p625_p3 = por %p624_p2, %p623_p1 }
  0x24   :  { %140 = vmatmul.mubr.f32.vlgmr.msra.gmra.mrb[0].mxu0 %v26_v56  ;;  %p626_p4 = pnand %p625_p3, %p619_p0 }
  0xf7   :  { %v491_v0 = vpop.f32.mrb[0].mxu0 }
  0xf8   :  { %v492_v2 = vpop.f32.mrb[1].mxu0 }
  0xf9   :  { %v493_v3 = vadd.f32 %v492_v2, %v491_v0 }
  0xfb   :  { %v142_v4 = vadd.f32 %v493_v3, %v28_v1 }
  0xfd   :  { %v145_v5 = vmax.f32 %v142_v4, 0.0 }
  0xff   :  { %523 = vmatmul.mubr.msk.f32.vlgmr.msra.gmra.mrb[0].mxu1 %vm146_vm1, %v145_v5 }
 0x100   :  { %529 = vmatprep.mubr.msk.f32.mxu1 %vm643_vm0, %v644_v63  ;;  %578 = vmatpush3.bf16.msra.mxu1 %v577_v13 }
 0x101   :  { %580 = vmatprep.subr.bf16.mxu1 %v579_v17 }
 0x1d2   :  { %v216_v7 = vpop.f32.mrb[0].mxu1 }
 0x1d3   :  { %v217_v8 = vadd.f32 %v216_v7, %v29_v6  ;;  %v524_v9 = vpop.f32.mrb[1].mxu1 }
 0x1d5   :  { %v220_v10 = vmul.f32 0.5, %v217_v8  ;;  %432 = vst [vmem:[%s911_s7] sm:$0xff] %v217_v8  ;;  %s645_s7 = smov 112  }
 0x1d7   :  { %v221_v14 = vmul.f32 1.442695, %v220_v10 }
 0x1d9   :  { %600 = vpow2.f32 %v221_v14 }
 0x1e3   :  { %v601_v18 = vpop.eup %600 }
 0x1e4   :  { %225 = vrot.lane.b32.xlu0 %v601_v18, %s645_s7 }
 0x256   :  { %v226_v22 = vpop.permute.xlu0 %225 }
 0x257   :  { %v228_v25 = vmul.f32 %v226_v22, %v223_v19 }
 0x259   :  { %v229_v27 = vadd.f32 %v228_v25, %v217_v8 }
 0x25b   :  { %530 = vmatmul.mubr.msk.f32.vlgmr.msra.gmra.mrb[2].mxu1 %vm230_vm2, %v229_v27 }
 0x25c   :  { %582 = vmatpush1.bf16.msra.mxu1 %v581_v26  ;;  %399 = vmatprep.mubr.f32.mxu1 %v644_v63 }
 0x25d   :  { %584 = vmatprep.subr.bf16.mxu1 %v583_v28 }
 0x260   :  { %586 = vmatpush1.bf16.msra.mxu1 %v585_v33 }
 0x261   :  { %588 = vmatprep.subr.bf16.mxu1 %v587_v34 }
 0x264   :  { %590 = vmatpush1.bf16.msra.mxu1 %v589_v37 }
 0x265   :  { %592 = vmatprep.subr.bf16.mxu1 %v591_v40 }
 0x268   :  { %594 = vmatpush1.bf16.msra.mxu1 %v593_v43 }
 0x32e   :  { %v300_v45 = vpop.f32.mrb[2].mxu1 }
 0x32f   :  { %v301_v46 = vadd.f32 %v300_v45, %v30_v44  ;;  %v531_v47 = vpop.f32.mrb[3].mxu1 }
 0x331   :  { %v304_v48 = vmax.f32 %v301_v46, 0.0 }
 0x333   :  { %454 = vmatmul.mubr.msk.f32.vlgmr.msra.gmra.mrb[4].mxu1 %vm146_vm1, %v304_v48 }
 0x406   :  { %v401_v56 = vpop.f32.mrb[4].mxu1 }
 0x407   :  { %v402_v57 = vadd.f32 %v401_v56, %v325_v54  ;;  %v403_v58 = vpop.f32.mrb[5].mxu1 }
 0x408   :  { %v404_v59 = vadd.f32 %v403_v58, %v329_v55 }
 0x409   :  { %v455_v60 = vmul.f32 -1.442695, %v402_v57 }
 0x40a   :  { %v456_v61 = vmul.f32 -1.442695, %v404_v59 }
 0x40b   :  { %602 = vpow2.f32 %v455_v60 }
 0x40c   :  { %604 = vpow2.f32 %v456_v61 }
 0x415   :  { %v603_v62 = vpop.eup %602 }
 0x416   :  { %v605_v63 = vpop.eup %604  ;;  %v412_v0 = vadd.f32 1.0, %v603_v62 }
 0x417   :  { %v413_v1 = vadd.f32 1.0, %v605_v63 }
 0x418   :  { %606 = vrcp.f32 %v412_v0 }
 0x419   :  { %608 = vrcp.f32 %v413_v1 }
 0x422   :  { %v607_v2 = vpop.eup %606 }
 0x423   :  { %v609_v3 = vpop.eup %608  ;;  %v457_v4 = vmul.f32 -1.442695, %v607_v2 }
 0x424   :  { %v458_v5 = vmul.f32 -1.442695, %v609_v3 }
 0x425   :  { %610 = vpow2.f32 %v457_v4 }
 0x426   :  { %612 = vpow2.f32 %v458_v5 }
 0x42f   :  { %v611_v6 = vpop.eup %610 }
 0x430   :  { %v613_v7 = vpop.eup %612  ;;  %v424_v8 = vadd.f32 1.0, %v611_v6 }
 0x431   :  { %v425_v9 = vadd.f32 1.0, %v613_v7 }
 0x432   :  { %614 = vrcp.f32 %v424_v8 }
 0x433   :  { %616 = vrcp.f32 %v425_v9 }
 0x43c   :  { %v615_v10 = vpop.eup %614 }
 0x43d   :  { %v617_v11 = vpop.eup %616  ;;  %430 = vst [vmem:[#allocation2] sm:$0xff] %v615_v10 }
 0x43e   :  { %431 = vst [vmem:[#allocation2 + $0x8] sm:$0xff] %v617_v11 }
 0x43f   :  { %629 = shalt.err (!%p626_p4)
}
 0x440   :  { %s630_s12 = scalar_lea.hbm %s910_s6, 256 }
 0x441   :  { %p631_p5 = scmp.ne.s32.totalorder %s910_s6, %s630_s12  ;;  %p634_p6 = scmp.lt.u32.totalorder %s630_s12, %s910_s6 }
 0x443   :  { %p636_p7 = pnand %p634_p6, %p631_p5 }
 0x445   :  { %639 = shalt.err (!%p636_p7)
}
 0x446   :  { %442 = dma.vmem_to_hbm [thread:$0]  %s440_s5, 256, %s910_s6, [#allocation3]  }
 0x447   :  { %640 = dma.done.wait [#allocation3], 256  }
 0x448   :  { %641 = vsyncadd [#allocation3], 4294967040 }
 0x449   :  { %450 = vsyncpa [#allocation3], 1 }

</bundles_post_ra>
